<compile_context>
chip_gen: v6e
topology: v6e:2x2x1
jax: 0.10.0
libtpu: 0.0.40
codegen_flags: <defaults>
</compile_context>

<pallas_src>
import math
import jax
import jax.numpy as jnp
from jax.experimental import pallas as pl
from jax.experimental.pallas import tpu as pltpu

# ----------------------------- configuration -------------------------------
INPUT_DIM  = 16          # input_dim
HIDDEN_DIM = 32          # hidden_dim
OUT_DIM    = 8           # out_dim
HOP        = 3           # hop (number of graphs summed over)
N_NODES    = 96          # nodes in each example graph
LANES      = 128         # TPU lane width
N_PAD      = 128         # node count zero-padded to lane width

# Parameter-slab row layout (each weight occupies a full 128-row section).
R_W0      = 0            # rows   0:128  -> W0 padded to (128, 128)
R_W1      = LANES        # rows 128:256  -> W1 padded to (128, 128)
SLAB_ROWS = 2 * LANES    # 256


# ------------------------------- kernel ------------------------------------
def gcn_hop_kernel(adj_ref, x_ref, slab_ref, o_ref):
    """One grid step = one hop: o += Â @ (relu(Â @ (X @ W0)) @ W1).

    adj_ref : (1, N_PAD, N_PAD) bf16   normalized adjacency of graphs[hop]
    x_ref   : (N_PAD, 128)      bf16   feats, zero-padded (shared, constant idx)
    slab_ref: (256, 128)        bf16   W0 | W1, zero-padded (shared, constant idx)
    o_ref   : (N_PAD, 128)      f32    hop-sum accumulator (resident across grid)
    """
    hop = pl.program_id(0)

    @pl.when(hop == 0)
    def _init():
        o_ref[...] = jnp.zeros_like(o_ref)

    adj = adj_ref[0]                              # (128, 128) bf16
    x   = x_ref[...]                              # (128, 128) bf16
    w0  = slab_ref[R_W0:R_W0 + LANES, :]          # (128, 128) bf16
    w1  = slab_ref[R_W1:R_W1 + LANES, :]          # (128, 128) bf16

    # GraphConv layer 0 (input -> hidden, bias=False):  Â @ (X @ W0)
    xw0 = jnp.dot(x, w0, preferred_element_type=jnp.float32)
    h1  = jnp.dot(adj, xw0.astype(jnp.bfloat16),
                  preferred_element_type=jnp.float32)
    h1  = jnp.maximum(h1, 0.0)                    # activation (ReLU), f32
    # dropout(drops[1]) is identity in eval mode.

    # GraphConv layer 1 (hidden -> out, bias=False, last layer -> no activation)
    h1w1 = jnp.dot(h1.astype(jnp.bfloat16), w1,
                   preferred_element_type=jnp.float32)
    h2   = jnp.dot(adj, h1w1.astype(jnp.bfloat16),
                   preferred_element_type=jnp.float32)

    o_ref[...] += h2                              # z = sum over hops


# ------------------------------- wrapper ------------------------------------
def _pad_inputs(adjs, x):
    """Zero-pad node / feature dims to 128 and cast MXU operands to bf16."""
    hop, n, _ = adjs.shape
    adj_p = jnp.zeros((hop, N_PAD, N_PAD), jnp.float32).at[:, :n, :n].set(adjs)
    x_p = jnp.zeros((N_PAD, LANES), jnp.float32).at[:n, :INPUT_DIM].set(x)
    return adj_p.astype(jnp.bfloat16), x_p.astype(jnp.bfloat16)


def lwpcgr_forward(adjs, x, slab):
    """adjs: (hop, n, n) f32 normalized adjacencies; x: (n, INPUT_DIM) f32;
    slab: packed bf16 weights. Returns (n, OUT_DIM) f32."""
    hop, n, _ = adjs.shape
    assert n <= N_PAD and x.shape == (n, INPUT_DIM)
    adj_p, x_p = _pad_inputs(adjs, x)

    flops = hop * 4 * 2 * N_PAD * N_PAD * LANES
    bytes_accessed = (2 * (adj_p.size + x_p.size + int(slab.size))
                      + 4 * N_PAD * LANES)

    out_padded = pl.pallas_call(
        gcn_hop_kernel,
        out_shape=jax.ShapeDtypeStruct((N_PAD, LANES), jnp.float32),
        grid=(hop,),
        in_specs=[
            pl.BlockSpec((1, N_PAD, N_PAD), lambda i: (i, 0, 0)),   # Â per hop
            pl.BlockSpec((N_PAD, LANES), lambda i: (0, 0)),         # feats
            pl.BlockSpec((SLAB_ROWS, LANES), lambda i: (0, 0)),     # weight slab
        ],
        out_specs=pl.BlockSpec((N_PAD, LANES), lambda i: (0, 0)),   # accumulator
        compiler_params=pltpu.CompilerParams(
            dimension_semantics=("arbitrary",)),
        cost_estimate=pl.CostEstimate(
            flops=int(flops), transcendentals=0,
            bytes_accessed=int(bytes_accessed)),
    )(adj_p, x_p, slab)

    # Lane-dense store inside the kernel; trim zero padding on the host.
    return out_padded[:n, :OUT_DIM]


# ---------------------- deterministic parameter init ------------------------
def init_params(key):
    """GraphConv weights (bias=False), DGL default xavier_uniform init,
    stored as (in, out)."""
    k0, k1 = jax.random.split(key)

    def xavier(k, fan_in, fan_out):
        bound = math.sqrt(6.0 / (fan_in + fan_out))
        return jax.random.uniform(k, (fan_in, fan_out), jnp.float32,
                                  -bound, bound)

    return dict(w0=xavier(k0, INPUT_DIM, HIDDEN_DIM),
                w1=xavier(k1, HIDDEN_DIM, OUT_DIM))


def pack_params(p):
    """Pack W0/W1 into one zero-padded, lane-dense (256, 128) bf16 slab."""
    slab = jnp.zeros((SLAB_ROWS, LANES), jnp.float32)
    slab = slab.at[R_W0:R_W0 + INPUT_DIM, :HIDDEN_DIM].set(p["w0"])
    slab = slab.at[R_W1:R_W1 + HIDDEN_DIM, :OUT_DIM].set(p["w1"])
    return slab.astype(jnp.bfloat16)


# ------------------------ example graph construction -------------------------
def make_graphs(key, n, hop, p=0.08):
    """`hop` random undirected graphs with self-loops, returned as dense
    symmetric-normalized adjacencies Â = D^{-1/2} A D^{-1/2} (deg clamped >=1),
    matching DGL GraphConv norm='both' on an undirected graph."""
    keys = jax.random.split(key, hop)
    eye = jnp.eye(n, dtype=jnp.float32)
    adjs = []
    for i in range(hop):
        u = jax.random.uniform(keys[i], (n, n))
        a = (u < p).astype(jnp.float32)
        a = jnp.maximum(a, a.T)                 # undirected
        a = jnp.maximum(a, eye)                 # self-loops (example graphs)
        deg = jnp.clip(a.sum(axis=1), 1.0, None)
        dinv = jax.lax.rsqrt(deg)
        adjs.append(a * dinv[:, None] * dinv[None, :])
    return jnp.stack(adjs, axis=0)              # (hop, n, n)


# --------------------------- pure-JAX reference ------------------------------
def lwpcgr_reference(adjs, x, p):
    """f32 reference of lwpcgr_2.forward (prop_type='GCN', eval mode)."""
    w0, w1 = p["w0"], p["w1"]
    z = jnp.zeros((x.shape[0], OUT_DIM), jnp.float32)
    for i in range(adjs.shape[0]):
        a = adjs[i]
        h = x                                   # dropout(drops[0]) -> identity
        h = a @ (h @ w0)                        # GraphConv layer 0
        h = jnp.maximum(h, 0.0)                 # activation; dropout -> identity
        h = a @ (h @ w1)                        # GraphConv layer 1 (last)
        z = z + h                               # hop sum
    return z


# --------------------------------- main --------------------------------------
if __name__ == "__main__":
    key = jax.random.PRNGKey(0)
    k_g, k_x, k_p = jax.random.split(key, 3)

    adjs = make_graphs(k_g, N_NODES, HOP)                       # (3, 96, 96)
    x = jax.random.normal(k_x, (N_NODES, INPUT_DIM), jnp.float32)
    params = init_params(k_p)
    slab = pack_params(params)

    out = lwpcgr_forward(adjs, x, slab)
    out = jax.block_until_ready(out)

    ref = lwpcgr_reference(adjs, x, params)
    assert out.shape == (N_NODES, OUT_DIM)
    max_err = float(jnp.max(jnp.abs(out - ref)))
    # bf16 MXU operands vs f32 reference -> loosened tolerance.
    assert jnp.allclose(out, ref, atol=5e-2, rtol=5e-2), (
        f"mismatch vs reference (max abs err {max_err})")

    print("KERNEL_OK")
</pallas_src>

<mosaic_0001>
module attributes {stable_mosaic.version = 11 : i64} {
  func.func @gcn_hop_kernel(%arg0: i32, %arg1: memref<1x128x128xbf16, #tpu.memory_space<vmem>>, %arg2: memref<128x128xbf16, #tpu.memory_space<vmem>>, %arg3: memref<256x128xbf16, #tpu.memory_space<vmem>>, %arg4: memref<128x128xf32, #tpu.memory_space<vmem>>) attributes {dimension_semantics = [#tpu.dimension_semantics<arbitrary>], iteration_bounds = array<i64: 3>, scalar_prefetch = 0 : i64, scratch_operands = 0 : i64, tpu.core_type = #tpu.core_type<tc>, window_params = [{transform_indices = @transform_0, window_bounds = array<i64: 1, 128, 128>}, {pipeline_mode = #tpu.pipeline_mode<synchronous>, transform_indices = @transform_1, window_bounds = array<i64: 128, 128>}, {pipeline_mode = #tpu.pipeline_mode<synchronous>, transform_indices = @transform_2, window_bounds = array<i64: 256, 128>}, {pipeline_mode = #tpu.pipeline_mode<synchronous>, transform_indices = @transform_3, window_bounds = array<i64: 128, 128>}]} {
    %c0_i32 = arith.constant 0 : i32
    %0 = arith.cmpi eq, %arg0, %c0_i32 : i32
    %1 = arith.extui %0 : i1 to i32
    %c0_i32_0 = arith.constant 0 : i32
    %2 = arith.cmpi ne, %1, %c0_i32_0 : i32
    scf.if %2 {
      %cst_16 = arith.constant 0.000000e+00 : f32
      %20 = vector.broadcast %cst_16 : f32 to vector<128x128xf32>
      %c0_17 = arith.constant 0 : index
      %c0_18 = arith.constant 0 : index
      %21 = vector.load %arg4[%c0_17, %c0_18] : memref<128x128xf32, #tpu.memory_space<vmem>>, vector<128x128xf32>
      tpu.vector_store %arg4[%c0_17, %c0_18], %20 {strides = array<i32>} : memref<128x128xf32, #tpu.memory_space<vmem>>, vector<128x128xf32>,
    } else {
    }
    %c0 = arith.constant 0 : index
    %c0_1 = arith.constant 0 : index
    %c0_2 = arith.constant 0 : index
    %3 = vector.load %arg1[%c0, %c0_1, %c0_2] : memref<1x128x128xbf16, #tpu.memory_space<vmem>>, vector<1x128x128xbf16>
    %4 = vector.shape_cast %3 : vector<1x128x128xbf16> to vector<128x128xbf16>
    %c0_3 = arith.constant 0 : index
    %c0_4 = arith.constant 0 : index
    %5 = vector.load %arg2[%c0_3, %c0_4] : memref<128x128xbf16, #tpu.memory_space<vmem>>, vector<128x128xbf16>
    %c0_5 = arith.constant 0 : index
    %c0_6 = arith.constant 0 : index
    %6 = vector.load %arg3[%c0_5, %c0_6] : memref<256x128xbf16, #tpu.memory_space<vmem>>, vector<128x128xbf16>
    %c128 = arith.constant 128 : index
    %c0_7 = arith.constant 0 : index
    %7 = vector.load %arg3[%c128, %c0_7] : memref<256x128xbf16, #tpu.memory_space<vmem>>, vector<128x128xbf16>
    %cst = arith.constant dense<0.000000e+00> : vector<128x128xf32>
    %8 = tpu.matmul %5, %6, %cst {dimension_numbers = #tpu.dot_dimension_numbers<[1], [0], [0], [1], [0, 0, 1, 1], [], []>} : vector<128x128xbf16>, vector<128x128xbf16>, vector<128x128xf32> -> vector<128x128xf32>
    %9 = arith.truncf %8 : vector<128x128xf32> to vector<128x128xbf16>
    %cst_8 = arith.constant dense<0.000000e+00> : vector<128x128xf32>
    %10 = tpu.matmul %4, %9, %cst_8 {dimension_numbers = #tpu.dot_dimension_numbers<[1], [0], [0], [1], [0, 0, 1, 1], [], []>} : vector<128x128xbf16>, vector<128x128xbf16>, vector<128x128xf32> -> vector<128x128xf32>
    %cst_9 = arith.constant 0.000000e+00 : f32
    %11 = vector.broadcast %cst_9 : f32 to vector<128x128xf32>
    %12 = arith.maximumf %10, %11 : vector<128x128xf32>
    %13 = arith.truncf %12 : vector<128x128xf32> to vector<128x128xbf16>
    %cst_10 = arith.constant dense<0.000000e+00> : vector<128x128xf32>
    %14 = tpu.matmul %13, %7, %cst_10 {dimension_numbers = #tpu.dot_dimension_numbers<[1], [0], [0], [1], [0, 0, 1, 1], [], []>} : vector<128x128xbf16>, vector<128x128xbf16>, vector<128x128xf32> -> vector<128x128xf32>
    %15 = arith.truncf %14 : vector<128x128xf32> to vector<128x128xbf16>
    %cst_11 = arith.constant dense<0.000000e+00> : vector<128x128xf32>
    %16 = tpu.matmul %4, %15, %cst_11 {dimension_numbers = #tpu.dot_dimension_numbers<[1], [0], [0], [1], [0, 0, 1, 1], [], []>} : vector<128x128xbf16>, vector<128x128xbf16>, vector<128x128xf32> -> vector<128x128xf32>
    %c0_12 = arith.constant 0 : index
    %c0_13 = arith.constant 0 : index
    %17 = vector.load %arg4[%c0_12, %c0_13] : memref<128x128xf32, #tpu.memory_space<vmem>>, vector<128x128xf32>
    %18 = arith.addf %17, %16 : vector<128x128xf32>
    %c0_14 = arith.constant 0 : index
    %c0_15 = arith.constant 0 : index
    %19 = vector.load %arg4[%c0_14, %c0_15] : memref<128x128xf32, #tpu.memory_space<vmem>>, vector<128x128xf32>
    tpu.vector_store %arg4[%c0_14, %c0_15], %18 {strides = array<i32>} : memref<128x128xf32, #tpu.memory_space<vmem>>, vector<128x128xf32>,
    return
  }
  func.func @transform_0(%arg0: i32) -> (i32, i32, i32) {
    %c0_i32 = arith.constant 0 : i32
    %c0_i32_0 = arith.constant 0 : i32
    %c0_i32_1 = arith.constant 0 : i32
    return %arg0, %c0_i32, %c0_i32_0 : i32, i32, i32
  }
  func.func @transform_1(%arg0: i32) -> (i32, i32) {
    %c0_i32 = arith.constant 0 : i32
    %c0_i32_0 = arith.constant 0 : i32
    %c0_i32_1 = arith.constant 0 : i32
    return %c0_i32, %c0_i32_0 : i32, i32
  }
  func.func @transform_2(%arg0: i32) -> (i32, i32) {
    %c0_i32 = arith.constant 0 : i32
    %c0_i32_0 = arith.constant 0 : i32
    %c0_i32_1 = arith.constant 0 : i32
    return %c0_i32, %c0_i32_0 : i32, i32
  }
  func.func @transform_3(%arg0: i32) -> (i32, i32) {
    %c0_i32 = arith.constant 0 : i32
    %c0_i32_0 = arith.constant 0 : i32
    %c0_i32_1 = arith.constant 0 : i32
    return %c0_i32, %c0_i32_0 : i32, i32
  }
}

</mosaic_0001>

<bundles_post_ra>
// kernel: tpu_custom_call.1
= control target key start
LH: loop header
LB: loop body
LE: loop exit
PB: predicated region body
PF: predicated region fallthrough
CT: control target
= control target key end

     0   :  { %8 = vsyncpa [#allocation3], 0  ;;  %s1758_s0 = inlined_call_operand.hbm [shape: bf16[3,128,128], index: 0, kind: input, shape index: {}]   ;;  %s1759_s1 = inlined_call_operand.hbm [shape: bf16[128,128], index: 1, kind: input, shape index: {}]   ;;  %s1760_s2 = inlined_call_operand.hbm [shape: bf16[256,128], index: 2, kind: input, shape index: {}]   ;;  %s1761_s3 = inlined_call_operand.hbm [shape: f32[128,128], index: 3, kind: output, shape index: {}]  }
   0x1   :  { %10 = vsyncpa [#allocation3 + $0x1], 0 }
   0x2   :  { %11 = vsyncpa [#allocation6], 0 }
   0x3   :  { %12 = vsyncpa [#allocation4], 0  ;;  %s1560_s12 = smov 0   ;;  %s1562_s13 = smov 0  }
   0x4   :  { %s1564_s14 = smov 0   ;;  %s1566_s15 = smov 0  }
   0x5 LB: > { %s1579_s16 = sadd.s32 4294967295, %s1529_s15   ;;  %p38_p0 = scmp.ne.s32.totalorder %s1521_s13, %s1517_s12  ;;  %s1529_s15 = sphi %s1566_s15, %s1777_s15   ;;  %s1525_s14 = sphi %s1564_s14, %s1776_s14   ;;  %s1521_s13 = sphi %s1562_s13, %s1775_s13   ;;  %s1517_s12 = sphi %s1560_s12, %s1774_s12  }
   0x6   : > { %p1762_p1 = scmp.eq.s32.totalorder %s1579_s16, 0  ;;  %p1038_p2 = scmp.ge.s32.totalorder %s1529_s15, 1 }
   0x7   : > { %p112_p3 = scmp.lt.s32.totalorder %s1529_s15, 4  ;;  %s1531_s19 = smov [#allocation5]  }
   0x8   : > { %p1588_p5 = por %p1762_p1, %p38_p0  ;;  %s124_s20 = sshll.u32 %s1531_s19, 4  ;;  %s125_s20 = int_to_ptr.vmem [resolvable:$true] %s124_s20 }
   0x9   : > { %p1592_p6 = pnand %p1038_p2, %p112_p3  ;;  %s1532_s22 = smov [#allocation7]  }
   0xa   : > { %s1765_s17 = scalar_select %p1588_p5, 1, 0 }
   0xb   : > { %s1766_s18 = scalar_select %p1592_p6, 1, 0 }
   0xc   : > { %p1293_p7 = pneg %p1592_p6  ;;  %s137_s23 = sshll.u32 %s1532_s22, 4  ;;  %s138_s23 = int_to_ptr.vmem [resolvable:$true] %s137_s23 }
   0xd   : > { %s1394_s24 = scalar_lea.vmem %s125_s20, 1024  ;;  %p1402_p13 = scmp.lt.s32.totalorder %s125_s20, %s125_s20 }
   0xe   : > { %p1600_p8 = pnand %p1293_p7, %p1762_p1  ;;  %p1395_p10 = scmp.ne.s32.totalorder %s125_s20, %s1394_s24 }
   0xf   : > { %p1403_p0 = scmp.lt.s32.totalorder %s1394_s24, %s1394_s24 }
  0x10   : > { %p1385_p9 = pneg %p1600_p8 }
  0x11   : > { %p1404_p2 = por %p1403_p0, %p1402_p13 }
  0x12   : > { %p1397_p11 = pnand %p1395_p10, %p1385_p9 }
  0x14   : > { %p1398_p12 = pneg %p1397_p11 }
  0x16   : > { %p1405_p3 = pnand %p1404_p2, %p1398_p12 }
  0x18   : > { %1408 = shalt.err (!%p1405_p3)
}
  0x19   : > { %s1533_s25 = smov 64   ;;  %s1534_s26 = smov 4  }
  0x1a   : > { %1296 = dma.hbm_to_vmem [thread:$0]  (!%p1600_p8), %s1759_s1, 1024, %s125_s20, [#allocation6], %s1533_s25, %s1533_s25, %s1534_s26  }
  0x1b   : > { %s1420_s29 = scalar_lea.vmem %s138_s23, 2048  ;;  %p1428_p12 = scmp.lt.s32.totalorder %s138_s23, %s138_s23 }
  0x1c   : > { %p1421_p7 = scmp.ne.s32.totalorder %s138_s23, %s1420_s29  ;;  %p1429_p13 = scmp.lt.s32.totalorder %s1420_s29, %s1420_s29 }
  0x1e   : > { %p1423_p10 = pnand %p1421_p7, %p1385_p9  ;;  %p1430_p0 = por %p1429_p13, %p1428_p12 }
  0x20   : > { %p1424_p11 = pneg %p1423_p10 }
  0x22   : > { %p1431_p2 = pnand %p1430_p0, %p1424_p11 }
  0x24   : > { %1434 = shalt.err (!%p1431_p2)
}
  0x25   : > { %1299 = dma.hbm_to_vmem [thread:$0]  (!%p1600_p8), %s1760_s2, 2048, %s138_s23, [#allocation6], %s1533_s25, %s1533_s25, %s1534_s26  }
  0x26   : > { %s1629_s5 = sadd.s32 1, %s1529_s15   ;;  %s25_s6 = sadd.s32 1, %s1525_s14 }
  0x27   : > { %s22_s7 = ssub.s32 %s1529_s15, %s1629_s5  ;;  %p32_p9 = scmp.ne.s32.totalorder %s1525_s14, %s1521_s13 }
  0x28   : > { %p23_p3 = scmp.eq.s32.totalorder %s22_s7, 0  ;;  %p33_p7 = scmp.eq.s32.totalorder %s1529_s15, 0 }
  0x29   : > { %p1306_p10 = scmp.lt.s32.totalorder %s1529_s15, 3  ;;  %s151_s8 = sand.u32 1, %s1525_s14  }
  0x2a   : > { %s1640_s9 = scalar_select %p23_p3, %s1525_s14, %s25_s6  }
  0x2b   : > { %p34_p11 = por %p33_p7, %p32_p9  ;;  %s1042_s10 = sshll.u32 %s151_s8, 6 }
  0x2c   : > { %s1086_s11 = sshll.u32 %s1529_s15, 10  ;;  %s155_s21 = scalar_lea.vmem [#allocation2], %s1042_s10 }
  0x2d   : > { %s1646_s20 = scalar_lea.hbm %s1758_s0, %s1086_s11  ;;  %s162_s22 = sshll.u32 %s155_s21, 4  ;;  %s1652_s22 = int_to_ptr.vmem [resolvable:$true] %s162_s22 }
  0x2e   : > { %p1648_p8 = pnand %p1306_p10, %p34_p11  ;;  %s1654_s24 = scalar_lea.sflag [#allocation3], %s151_s8 }
  0x2f   : > { %s1435_s15 = scalar_lea.hbm %s1646_s20, 1024  ;;  %s1440_s29 = scalar_lea.hbm %s1758_s0, 3072 }
  0x30   : > { %p1436_p12 = scmp.ne.s32.totalorder %s1646_s20, %s1435_s15  ;;  %p1437_p13 = pneg %p1648_p8 }
  0x31   : > { %p1441_p9 = scmp.lt.s32.totalorder %s1646_s20, %s1758_s0  ;;  %p1442_p3 = scmp.lt.s32.totalorder %s1440_s29, %s1435_s15 }
  0x32   : > { %p1438_p0 = pnand %p1437_p13, %p1436_p12 }
  0x33   : > { %p1443_p7 = por %p1442_p3, %p1441_p9 }
  0x34   : > { %p1439_p2 = pneg %p1438_p0 }
  0x36   : > { %p1444_p10 = pnand %p1443_p7, %p1439_p2 }
  0x38   : > { %1447 = shalt.err (!%p1444_p10)
}
  0x39   : > { %s1448_s6 = scalar_lea.vmem %s1652_s22, 1024  ;;  %s1535_s7 = smov [#allocation2]  }
  0x3a   : > { %p1449_p11 = scmp.ne.s32.totalorder %s1652_s22, %s1448_s6  ;;  %s1453_s8 = sshll.u32 %s1535_s7, 4  ;;  %s1454_s8 = int_to_ptr.vmem [resolvable:$false] %s1453_s8 }
  0x3b   : > { %s1455_s10 = scalar_lea.vmem %s1454_s8, 2048  ;;  %p1456_p0 = scmp.lt.s32.totalorder %s1652_s22, %s1454_s8 }
  0x3c   : > { %p1451_p4 = pnand %p1449_p11, %p1437_p13  ;;  %p1457_p1 = scmp.lt.s32.totalorder %s1455_s10, %s1448_s6 }
  0x3e   : > { %p1452_p12 = pneg %p1451_p4  ;;  %p1458_p5 = por %p1457_p1, %p1456_p0 }
  0x40   : > { %p1459_p6 = pnand %p1458_p5, %p1452_p12 }
  0x42   : > { %1462 = shalt.err (!%p1459_p6)
}
  0x43   : > { %1303 = dma.hbm_to_vmem [thread:$0]  (!%p1648_p8), %s1646_s20, 1024, %s1652_s22, %s1654_s24, %s1533_s25, %s1533_s25, %s1534_s26  }
  0x44   : > { %p1769_p4 = scmp.ne.s32.totalorder %s1766_s18, 0 }
  0x45   : > { %s176_s11 = sand.u32 (!%p1769_p4), 1, %s1521_s13   ;;  %p1770_p1 = scmp.ne.s32.totalorder (!%p1769_p4), %s1765_s17, 0 }
  0x46   : > { %174 = sbr.rel (%p1769_p4) target bundleno = 1073 (0x431), region = 32  ;;  %s1046_s12 = sshll.u32 (!%p1769_p4), %s176_s11, 6 }
  0x47   : > { %s177_s19 = scalar_lea.sflag (!%p1769_p4), [#allocation3], %s176_s11  ;;  %s1681_s21 = scalar_lea.vmem (!%p1769_p4), [#allocation2], %s1046_s12 }
  0x4b   : > { %1504 = dma.done.wait (%p1770_p1), %s177_s19, 1024  }
  0x4c   : > { %1506 = vsyncadd (%p1770_p1), %s177_s19, 4294966272  ;;  %p1771_p5 = scmp.eq.s32.totalorder %s1579_s16, 0 }
  0x4e   : > { %1508 = dma.done.wait (%p1771_p5), [#allocation6], 3072   ;;  %p1772_p6 = pmov %p1771_p5 }
  0x4f   : > { %p1773_p8 = scmp.ne.s32.totalorder %s1579_s16, 0 }
  0x50   : > { %1510 = vsyncadd (%p1772_p6), [#allocation6], 4294964224 }
  0x51   : > { %210 = sbr.rel (%p1773_p8) target bundleno = 95 (0x5f), region = 48 }
  0x56   : > { %v1536_v0 = vmov 0.0  }
  0x57   : > { %211 = vst [vmem:[#allocation8] sm:$0xff] %v1536_v0  ;;  %212 = vst [vmem:[#allocation8 + $0x8] sm:$0xff] %v1536_v0 }
  0x58   : > { %213 = vst [vmem:[#allocation8 + $0x10] sm:$0xff] %v1536_v0  ;;  %214 = vst [vmem:[#allocation8 + $0x18] sm:$0xff] %v1536_v0 }
  0x59   : > { %215 = vst [vmem:[#allocation8 + $0x20] sm:$0xff] %v1536_v0  ;;  %216 = vst [vmem:[#allocation8 + $0x28] sm:$0xff] %v1536_v0 }
  0x5a   : > { %217 = vst [vmem:[#allocation8 + $0x30] sm:$0xff] %v1536_v0  ;;  %218 = vst [vmem:[#allocation8 + $0x38] sm:$0xff] %v1536_v0 }
  0x5b   : > { %219 = vst [vmem:[#allocation8 + $0x40] sm:$0xff] %v1536_v0  ;;  %220 = vst [vmem:[#allocation8 + $0x48] sm:$0xff] %v1536_v0 }
  0x5c   : > { %221 = vst [vmem:[#allocation8 + $0x50] sm:$0xff] %v1536_v0  ;;  %222 = vst [vmem:[#allocation8 + $0x58] sm:$0xff] %v1536_v0 }
  0x5d   : > { %223 = vst [vmem:[#allocation8 + $0x60] sm:$0xff] %v1536_v0  ;;  %224 = vst [vmem:[#allocation8 + $0x68] sm:$0xff] %v1536_v0 }
  0x5e   : > { %225 = vst [vmem:[#allocation8 + $0x70] sm:$0xff] %v1536_v0  ;;  %226 = vst [vmem:[#allocation8 + $0x78] sm:$0xff] %v1536_v0 }
  0x5f PF: > { %v1351_v1 = vld [vmem:[#allocation7 + $0x38] sm:$0xff]   ;;  %v1352_v2 = vld [vmem:[#allocation7 + $0x30] sm:$0xff]   ;;  %v1353_v3 = vld [vmem:[#allocation7 + $0x28] sm:$0xff]   ;;  %s1537_s17 = smov [#allocation8]   ;;  %p1309_p13 = scmp.eq.s32.totalorder %s1579_s16, 2 }
  0x60   : > { %1151 = vmatprep.subr.bf16.mxu0 %v1351_v1  ;;  %v1354_v4 = vld [vmem:[#allocation7 + $0x20] sm:$0xff]   ;;  %v1355_v6 = vld [vmem:[#allocation7 + $0x18] sm:$0xff]   ;;  %v1356_v7 = vld [vmem:[#allocation7 + $0x10] sm:$0xff]   ;;  %s965_s18 = sshll.u32 %s1537_s17, 4  ;;  %s966_s18 = int_to_ptr.vmem [resolvable:$true] %s965_s18 }
  0x61   : > { %1152 = vmatpush3.bf16.msra.mxu0 %v1351_v1  ;;  %v1359_v5 = vld [vmem:[#allocation5] sm:$0xff]   ;;  %v1357_v8 = vld [vmem:[#allocation7 + $0x8] sm:$0xff]   ;;  %v1361_v11 = vld [vmem:[#allocation5 + $0x10] sm:$0xff]   ;;  %s1463_s25 = scalar_lea.vmem %s966_s18, 2048  ;;  %p1470_p7 = scmp.lt.s32.totalorder %s966_s18, %s966_s18 }
  0x62   : > { %1153 = vmatprep.subr.bf16.mxu0 %v1352_v2  ;;  %1167 = vmatprep.mubr.bf16.mxu0 %v1359_v5  ;;  %v1358_v9 = vld [vmem:[#allocation7] sm:$0xff]   ;;  %v1360_v10 = vld [vmem:[#allocation5 + $0x8] sm:$0xff]   ;;  %v1362_v12 = vld [vmem:[#allocation5 + $0x18] sm:$0xff]   ;;  %p1464_p2 = scmp.ne.s32.totalorder %s966_s18, %s1463_s25  ;;  %p1471_p10 = scmp.lt.s32.totalorder %s1463_s25, %s1463_s25 }
  0x63   : > { %v1363_v13 = vld [vmem:[#allocation5 + $0x20] sm:$0xff]   ;;  %v1364_v14 = vld [vmem:[#allocation5 + $0x28] sm:$0xff]   ;;  %v1365_v15 = vld [vmem:[#allocation5 + $0x30] sm:$0xff]  }
  0x64   : > { %v1366_v16 = vld [vmem:[#allocation5 + $0x38] sm:$0xff]   ;;  %v1694_v17 = vld [vmem:[%s1681_s21] sm:$0xff]   ;;  %v1376_v19 = vld [vmem:[#allocation7 + $0x70] sm:$0xff]   ;;  %p1465_p9 = pnand %p1464_p2, %p1309_p13  ;;  %p1472_p11 = por %p1471_p10, %p1470_p7 }
  0x65   : > { %1154 = vmatpush3.bf16.msra.mxu0 %v1352_v2  ;;  %1199 = vmatprep.mubr.bf16.mxu1 %v1694_v17  ;;  %v1375_v18 = vld [vmem:[#allocation7 + $0x78] sm:$0xff]   ;;  %v1377_v20 = vld [vmem:[#allocation7 + $0x68] sm:$0xff]   ;;  %v1378_v21 = vld [vmem:[#allocation7 + $0x60] sm:$0xff]  }
  0x66   : > { %1155 = vmatprep.subr.bf16.mxu0 %v1353_v3  ;;  %v1379_v22 = vld [vmem:[#allocation7 + $0x58] sm:$0xff]   ;;  %v1698_v47 = vld [vmem:[%s1681_s21 + $0x8] sm:$0xff]   ;;  %v1701_v48 = vld [vmem:[%s1681_s21 + $0x10] sm:$0xff]   ;;  %p1466_p3 = pneg %p1465_p9 }
  0x67   : > { %v1706_v49 = vld [vmem:[%s1681_s21 + $0x18] sm:$0xff]   ;;  %v1709_v50 = vld [vmem:[%s1681_s21 + $0x20] sm:$0xff]   ;;  %v1714_v51 = vld [vmem:[%s1681_s21 + $0x28] sm:$0xff]  }
  0x68   : > { %v1717_v52 = vld [vmem:[%s1681_s21 + $0x30] sm:$0xff]   ;;  %v1722_v53 = vld [vmem:[%s1681_s21 + $0x38] sm:$0xff]   ;;  %v1381_v55 = vld [vmem:[#allocation7 + $0x48] sm:$0xff]   ;;  %p1473_p12 = pnand %p1472_p11, %p1466_p3 }
  0x69   : > { %1156 = vmatpush3.bf16.msra.mxu0 %v1353_v3  ;;  %v1380_v54 = vld [vmem:[#allocation7 + $0x50] sm:$0xff]   ;;  %v1382_v56 = vld [vmem:[#allocation7 + $0x40] sm:$0xff]  }
  0x6a   : > { %1157 = vmatprep.subr.bf16.mxu0 %v1354_v4 }
  0x6d   : > { %1158 = vmatpush3.bf16.msra.mxu0 %v1354_v4 }
  0x6e   : > { %1159 = vmatprep.subr.bf16.mxu0 %v1355_v6 }
  0x71   : > { %1160 = vmatpush3.bf16.msra.mxu0 %v1355_v6 }
  0x72   : > { %1161 = vmatprep.subr.bf16.mxu0 %v1356_v7 }
  0x75   : > { %1162 = vmatpush3.bf16.msra.mxu0 %v1356_v7 }
  0x76   : > { %1163 = vmatprep.subr.bf16.mxu0 %v1357_v8 }
  0x79   : > { %1164 = vmatpush3.bf16.msra.mxu0 %v1357_v8 }
  0x7a   : > { %1165 = vmatprep.subr.bf16.mxu0 %v1358_v9 }
  0x7d   : > { %1166 = vmatpush3.bf16.msra.mxu0 %v1358_v9 }
  0x7e   : > { %1215 = vmatprep.subr.bf16.mxu0 %v1375_v18 }
  0x80   : > { %1168 = vmatmul.mubr.bf16.vlgmr.msra.gmra.mxu0 %v1360_v10 }
  0x81   : > { %1171 = vmatprep.mubr.bf16.mxu0 %v1361_v11  ;;  %1216 = vmatpush3.bf16.msra.mxu0 %v1375_v18 }
  0x82   : > { %1217 = vmatprep.subr.bf16.mxu0 %v1376_v19 }
  0x85   : > { %1218 = vmatpush3.bf16.msra.mxu0 %v1376_v19 }
  0x86   : > { %1219 = vmatprep.subr.bf16.mxu0 %v1377_v20 }
  0x88   : > { %1172 = vmatmul.mubr.bf16.gmra.mxu0 %v1362_v12 }
  0x89   : > { %1175 = vmatprep.mubr.bf16.mxu0 %v1363_v13  ;;  %1220 = vmatpush3.bf16.msra.mxu0 %v1377_v20 }
  0x8a   : > { %1221 = vmatprep.subr.bf16.mxu0 %v1378_v21 }
  0x8d   : > { %1222 = vmatpush3.bf16.msra.mxu0 %v1378_v21 }
  0x8e   : > { %1223 = vmatprep.subr.bf16.mxu0 %v1379_v22 }
  0x90   : > { %1176 = vmatmul.mubr.bf16.gmra.mxu0 %v1364_v14 }
  0x91   : > { %1179 = vmatprep.mubr.bf16.mxu0 %v1365_v15  ;;  %1224 = vmatpush3.bf16.msra.mxu0 %v1379_v22 }
  0x92   : > { %1225 = vmatprep.subr.bf16.mxu0 %v1380_v54 }
  0x95   : > { %1226 = vmatpush3.bf16.msra.mxu0 %v1380_v54 }
  0x96   : > { %1227 = vmatprep.subr.bf16.mxu0 %v1381_v55 }
  0x98   : > { %1180 = vmatmul.mubr.bf16.gmra.mxu0 %v1366_v16 }
  0x99   : > { %1228 = vmatpush3.bf16.msra.mxu0 %v1381_v55 }
  0x9a   : > { %1229 = vmatprep.subr.bf16.mxu0 %v1382_v56 }
  0x9d   : > { %1230 = vmatpush3.bf16.msra.mxu0 %v1382_v56 }
 0x140   : > { %v1169_v23 = vpop.f32.mrf.mxu0 }
 0x142   : > { %v421_v24 = vpop.f32.mrf.mxu0 }
 0x144   : > { %v1170_v25 = vpop.f32.mrf.mxu0 }
 0x145   : > { %v485_v45 = vpack.c.bf16 %v1170_v25, %v1169_v23 }
 0x146   : > { %v424_v26 = vpop.f32.mrf.mxu0 }
 0x147   : > { %v484_v46 = vpack.c.bf16 %v424_v26, %v421_v24 }
 0x148   : > { %v1173_v27 = vpop.f32.mrf.mxu0 }
 0x14a   : > { %v437_v28 = vpop.f32.mrf.mxu0 }
 0x14c   : > { %v1174_v29 = vpop.f32.mrf.mxu0 }
 0x14d   : > { %v487_v43 = vpack.c.bf16 %v1174_v29, %v1173_v27 }
 0x14e   : > { %v440_v30 = vpop.f32.mrf.mxu0 }
 0x14f   : > { %v486_v44 = vpack.c.bf16 %v440_v30, %v437_v28 }
 0x150   : > { %v1177_v31 = vpop.f32.mrf.mxu0 }
 0x152   : > { %v453_v32 = vpop.f32.mrf.mxu0 }
 0x154   : > { %v1178_v33 = vpop.f32.mrf.mxu0 }
 0x155   : > { %v489_v41 = vpack.c.bf16 %v1178_v33, %v1177_v31 }
 0x156   : > { %v456_v34 = vpop.f32.mrf.mxu0 }
 0x157   : > { %v488_v42 = vpack.c.bf16 %v456_v34, %v453_v32 }
 0x158   : > { %v1181_v35 = vpop.f32.mrf.mxu0 }
 0x15a   : > { %v469_v36 = vpop.f32.mrf.mxu0 }
 0x15c   : > { %v1182_v37 = vpop.f32.mrf.mxu0 }
 0x15d   : > { %v491_v38 = vpack.c.bf16 %v1182_v37, %v1181_v35 }
 0x15e   : > { %v472_v39 = vpop.f32.mrf.mxu0 }
 0x15f   : > { %v490_v40 = vpack.c.bf16 %v472_v39, %v469_v36  ;;  %1183 = vmatprep.subr.bf16.mxu1 %v491_v38 }
 0x160   : > { %1184 = vmatpush3.bf16.msra.mxu1 %v491_v38 }
 0x161   : > { %1185 = vmatprep.subr.bf16.mxu1 %v490_v40 }
 0x164   : > { %1186 = vmatpush3.bf16.msra.mxu1 %v490_v40 }
 0x165   : > { %1187 = vmatprep.subr.bf16.mxu1 %v489_v41 }
 0x168   : > { %1188 = vmatpush3.bf16.msra.mxu1 %v489_v41 }
 0x169   : > { %1189 = vmatprep.subr.bf16.mxu1 %v488_v42 }
 0x16c   : > { %1190 = vmatpush3.bf16.msra.mxu1 %v488_v42 }
 0x16d   : > { %1191 = vmatprep.subr.bf16.mxu1 %v487_v43 }
 0x170   : > { %1192 = vmatpush3.bf16.msra.mxu1 %v487_v43 }
 0x171   : > { %1193 = vmatprep.subr.bf16.mxu1 %v486_v44 }
 0x174   : > { %1194 = vmatpush3.bf16.msra.mxu1 %v486_v44 }
 0x175   : > { %1195 = vmatprep.subr.bf16.mxu1 %v485_v45 }
 0x178   : > { %1196 = vmatpush3.bf16.msra.mxu1 %v485_v45 }
 0x179   : > { %1197 = vmatprep.subr.bf16.mxu1 %v484_v46 }
 0x17c   : > { %1198 = vmatpush3.bf16.msra.mxu1 %v484_v46 }
 0x17f   : > { %1200 = vmatmul.mubr.bf16.vlgmr.msra.gmra.mxu1 %v1698_v47 }
 0x180   : > { %1203 = vmatprep.mubr.bf16.mxu1 %v1701_v48 }
 0x187   : > { %1204 = vmatmul.mubr.bf16.gmra.mxu1 %v1706_v49 }
 0x188   : > { %1207 = vmatprep.mubr.bf16.mxu1 %v1709_v50 }
 0x18f   : > { %1208 = vmatmul.mubr.bf16.gmra.mxu1 %v1714_v51 }
 0x190   : > { %1211 = vmatprep.mubr.bf16.mxu1 %v1717_v52 }
 0x197   : > { %1212 = vmatmul.mubr.bf16.gmra.mxu1 %v1722_v53 }
 0x198   : > { %1263 = vmatprep.mubr.bf16.mxu1 %v1694_v17 }
 0x23f   : > { %v1201_v57 = vpop.f32.mrf.mxu1 }
 0x240   : > { %v639_v0 = vmax.f32 %v1201_v57, 0.0 }
 0x241   : > { %v574_v58 = vpop.f32.mrf.mxu1 }
 0x242   : > { %v637_v62 = vmax.f32 %v574_v58, 0.0 }
 0x243   : > { %v1202_v59 = vpop.f32.mrf.mxu1 }
 0x244   : > { %v640_v60 = vmax.f32 %v1202_v59, 0.0 }
 0x245   : > { %v577_v61 = vpop.f32.mrf.mxu1 }
 0x246   : > { %v638_v63 = vmax.f32 %v577_v61, 0.0  ;;  %v654_v3 = vpack.c.bf16 %v640_v60, %v639_v0  ;;  %v913_v0 = vld [vmem:[#allocation8 + $0x10] sm:$0xff] }
 0x247   : > { %v1205_v1 = vpop.f32.mrf.mxu1 }
 0x248   : > { %v653_v2 = vpack.c.bf16 %v638_v63, %v637_v62  ;;  %v643_v10 = vmax.f32 %v1205_v1, 0.0 }
 0x249   : > { %v590_v4 = vpop.f32.mrf.mxu1 }
 0x24a   : > { %1231 = vmatprep.mubr.bf16.mxu0 %v653_v2  ;;  %v641_v8 = vmax.f32 %v590_v4, 0.0  ;;  %v911_v2 = vld [vmem:[#allocation8] sm:$0xff] }
 0x24b   : > { %v1206_v5 = vpop.f32.mrf.mxu1  ;;  %1232 = vmatmul.mubr.bf16.vlgmr.msra.gmra.mxu0 %v654_v3 }
 0x24c   : > { %v644_v6 = vmax.f32 %v1206_v5, 0.0  ;;  %v914_v5 = vld [vmem:[#allocation8 + $0x18] sm:$0xff] }
 0x24d   : > { %v593_v7 = vpop.f32.mrf.mxu1 }
 0x24e   : > { %v642_v9 = vmax.f32 %v593_v7, 0.0  ;;  %v656_v13 = vpack.c.bf16 %v644_v6, %v643_v10  ;;  %v918_v10 = vld [vmem:[#allocation8 + $0x38] sm:$0xff] }
 0x24f   : > { %v1209_v11 = vpop.f32.mrf.mxu1 }
 0x250   : > { %v655_v12 = vpack.c.bf16 %v642_v9, %v641_v8  ;;  %v647_v20 = vmax.f32 %v1209_v11, 0.0 }
 0x251   : > { %v606_v14 = vpop.f32.mrf.mxu1 }
 0x252   : > { %1235 = vmatprep.mubr.bf16.mxu0 %v655_v12  ;;  %v645_v18 = vmax.f32 %v606_v14, 0.0 }
 0x253   : > { %v1210_v15 = vpop.f32.mrf.mxu1  ;;  %1236 = vmatmul.mubr.bf16.gmra.mxu0 %v656_v13  ;;  %v916_v13 = vld [vmem:[#allocation8 + $0x28] sm:$0xff] }
 0x254   : > { %v648_v16 = vmax.f32 %v1210_v15, 0.0 }
 0x255   : > { %v609_v17 = vpop.f32.mrf.mxu1 }
 0x256   : > { %v646_v19 = vmax.f32 %v609_v17, 0.0  ;;  %v658_v23 = vpack.c.bf16 %v648_v16, %v647_v20  ;;  %v921_v16 = vld [vmem:[#allocation8 + $0x50] sm:$0xff] }
 0x257   : > { %v1213_v21 = vpop.f32.mrf.mxu1 }
 0x258   : > { %v657_v22 = vpack.c.bf16 %v646_v19, %v645_v18  ;;  %v651_v30 = vmax.f32 %v1213_v21, 0.0  ;;  %v919_v19 = vld [vmem:[#allocation8 + $0x40] sm:$0xff] }
 0x259   : > { %v622_v24 = vpop.f32.mrf.mxu1 }
 0x25a   : > { %1239 = vmatprep.mubr.bf16.mxu0 %v657_v22  ;;  %v649_v28 = vmax.f32 %v622_v24, 0.0  ;;  %v922_v22 = vld [vmem:[#allocation8 + $0x58] sm:$0xff] }
 0x25b   : > { %v1214_v25 = vpop.f32.mrf.mxu1  ;;  %1240 = vmatmul.mubr.bf16.gmra.mxu0 %v658_v23 }
 0x25c   : > { %v652_v26 = vmax.f32 %v1214_v25, 0.0  ;;  %v920_v25 = vld [vmem:[#allocation8 + $0x48] sm:$0xff] }
 0x25d   : > { %v625_v27 = vpop.f32.mrf.mxu1 }
 0x25e   : > { %v650_v29 = vmax.f32 %v625_v27, 0.0  ;;  %v660_v32 = vpack.c.bf16 %v652_v26, %v651_v30 }
 0x260   : > { %v659_v31 = vpack.c.bf16 %v650_v29, %v649_v28  ;;  %v925_v28 = vld [vmem:[#allocation8 + $0x70] sm:$0xff] }
 0x262   : > { %1243 = vmatprep.mubr.bf16.mxu0 %v659_v31  ;;  %v923_v31 = vld [vmem:[#allocation8 + $0x60] sm:$0xff] }
 0x263   : > { %1244 = vmatmul.mubr.bf16.gmra.mxu0 %v660_v32 }
 0x30b   : > { %v1233_v33 = vpop.f32.mrf.mxu0 }
 0x30d   : > { %v743_v34 = vpop.f32.mrf.mxu0 }
 0x30f   : > { %v1234_v35 = vpop.f32.mrf.mxu0 }
 0x310   : > { %v807_v62 = vpack.c.bf16 %v1234_v35, %v1233_v33 }
 0x311   : > { %v746_v36 = vpop.f32.mrf.mxu0 }
 0x312   : > { %v806_v63 = vpack.c.bf16 %v746_v36, %v743_v34  ;;  %v926_v34 = vld [vmem:[#allocation8 + $0x78] sm:$0xff] }
 0x313   : > { %v1237_v37 = vpop.f32.mrf.mxu0 }
 0x315   : > { %v759_v38 = vpop.f32.mrf.mxu0 }
 0x317   : > { %v1238_v39 = vpop.f32.mrf.mxu0 }
 0x318   : > { %v809_v60 = vpack.c.bf16 %v1238_v39, %v1237_v37  ;;  %v924_v37 = vld [vmem:[#allocation8 + $0x68] sm:$0xff] }
 0x319   : > { %v762_v40 = vpop.f32.mrf.mxu0 }
 0x31a   : > { %v808_v61 = vpack.c.bf16 %v762_v40, %v759_v38 }
 0x31b   : > { %v1241_v41 = vpop.f32.mrf.mxu0 }
 0x31d   : > { %v775_v42 = vpop.f32.mrf.mxu0 }
 0x31f   : > { %v1242_v43 = vpop.f32.mrf.mxu0 }
 0x320   : > { %v811_v58 = vpack.c.bf16 %v1242_v43, %v1241_v41 }
 0x321   : > { %v778_v44 = vpop.f32.mrf.mxu0 }
 0x322   : > { %v810_v59 = vpack.c.bf16 %v778_v44, %v775_v42 }
 0x323   : > { %v1245_v45 = vpop.f32.mrf.mxu0 }
 0x325   : > { %v791_v46 = vpop.f32.mrf.mxu0 }
 0x327   : > { %v1246_v54 = vpop.f32.mrf.mxu0 }
 0x328   : > { %v813_v55 = vpack.c.bf16 %v1246_v54, %v1245_v45 }
 0x329   : > { %v794_v56 = vpop.f32.mrf.mxu0 }
 0x32a   : > { %v812_v57 = vpack.c.bf16 %v794_v56, %v791_v46  ;;  %1247 = vmatprep.subr.bf16.mxu1 %v813_v55 }
 0x32b   : > { %1248 = vmatpush3.bf16.msra.mxu1 %v813_v55 }
 0x32c   : > { %1249 = vmatprep.subr.bf16.mxu1 %v812_v57 }
 0x32f   : > { %1250 = vmatpush3.bf16.msra.mxu1 %v812_v57 }
 0x330   : > { %1251 = vmatprep.subr.bf16.mxu1 %v811_v58 }
 0x333   : > { %1252 = vmatpush3.bf16.msra.mxu1 %v811_v58 }
 0x334   : > { %1253 = vmatprep.subr.bf16.mxu1 %v810_v59 }
 0x337   : > { %1254 = vmatpush3.bf16.msra.mxu1 %v810_v59 }
 0x338   : > { %1255 = vmatprep.subr.bf16.mxu1 %v809_v60 }
 0x33b   : > { %1256 = vmatpush3.bf16.msra.mxu1 %v809_v60 }
 0x33c   : > { %1257 = vmatprep.subr.bf16.mxu1 %v808_v61 }
 0x33f   : > { %1258 = vmatpush3.bf16.msra.mxu1 %v808_v61 }
 0x340   : > { %1259 = vmatprep.subr.bf16.mxu1 %v807_v62 }
 0x343   : > { %1260 = vmatpush3.bf16.msra.mxu1 %v807_v62 }
 0x344   : > { %1261 = vmatprep.subr.bf16.mxu1 %v806_v63 }
 0x347   : > { %1262 = vmatpush3.bf16.msra.mxu1 %v806_v63 }
 0x34a   : > { %1264 = vmatmul.mubr.bf16.vlgmr.msra.gmra.mxu1 %v1698_v47 }
 0x34b   : > { %1267 = vmatprep.mubr.bf16.mxu1 %v1701_v48  ;;  %v912_v48 = vld [vmem:[#allocation8 + $0x8] sm:$0xff] }
 0x352   : > { %1268 = vmatmul.mubr.bf16.gmra.mxu1 %v1706_v49 }
 0x353   : > { %1271 = vmatprep.mubr.bf16.mxu1 %v1709_v50  ;;  %v917_v50 = vld [vmem:[#allocation8 + $0x30] sm:$0xff] }
 0x35a   : > { %1272 = vmatmul.mubr.bf16.gmra.mxu1 %v1714_v51 }
 0x35b   : > { %1275 = vmatprep.mubr.bf16.mxu1 %v1717_v52  ;;  %v915_v52 = vld [vmem:[#allocation8 + $0x20] sm:$0xff] }
 0x362   : > { %1276 = vmatmul.mubr.bf16.gmra.mxu1 %v1722_v53 }
 0x40a   : > { %v1265_v1 = vpop.f32.mrf.mxu1 }
 0x40b   : > { %v929_v3 = vadd.f32 %v1265_v1, %v913_v0 }
 0x40c   : > { %v848_v4 = vpop.f32.mrf.mxu1 }
 0x40d   : > { %945 = vst [vmem:[#allocation8 + $0x10] sm:$0xff] %v929_v3  ;;  %v927_v47 = vadd.f32 %v911_v2, %v848_v4 }
 0x40e   : > { %v1266_v6 = vpop.f32.mrf.mxu1 }
 0x40f   : > { %943 = vst [vmem:[#allocation8] sm:$0xff] %v927_v47  ;;  %v930_v49 = vadd.f32 %v1266_v6, %v914_v5 }
 0x410   : > { %v851_v7 = vpop.f32.mrf.mxu1 }
 0x411   : > { %946 = vst [vmem:[#allocation8 + $0x18] sm:$0xff] %v930_v49  ;;  %v928_v51 = vadd.f32 %v912_v48, %v851_v7 }
 0x412   : > { %v1269_v8 = vpop.f32.mrf.mxu1 }
 0x413   : > { %944 = vst [vmem:[#allocation8 + $0x8] sm:$0xff] %v928_v51  ;;  %v933_v53 = vadd.f32 %v1269_v8, %v917_v50 }
 0x414   : > { %v864_v9 = vpop.f32.mrf.mxu1 }
 0x415   : > { %949 = vst [vmem:[#allocation8 + $0x30] sm:$0xff] %v933_v53  ;;  %v931_v11 = vadd.f32 %v915_v52, %v864_v9 }
 0x416   : > { %v1270_v12 = vpop.f32.mrf.mxu1 }
 0x417   : > { %947 = vst [vmem:[#allocation8 + $0x20] sm:$0xff] %v931_v11  ;;  %v934_v14 = vadd.f32 %v1270_v12, %v918_v10 }
 0x418   : > { %v867_v15 = vpop.f32.mrf.mxu1 }
 0x419   : > { %950 = vst [vmem:[#allocation8 + $0x38] sm:$0xff] %v934_v14  ;;  %v932_v17 = vadd.f32 %v916_v13, %v867_v15 }
 0x41a   : > { %v1273_v18 = vpop.f32.mrf.mxu1 }
 0x41b   : > { %948 = vst [vmem:[#allocation8 + $0x28] sm:$0xff] %v932_v17  ;;  %v937_v20 = vadd.f32 %v1273_v18, %v921_v16 }
 0x41c   : > { %v880_v21 = vpop.f32.mrf.mxu1 }
 0x41d   : > { %953 = vst [vmem:[#allocation8 + $0x50] sm:$0xff] %v937_v20  ;;  %v935_v23 = vadd.f32 %v919_v19, %v880_v21 }
 0x41e   : > { %v1274_v24 = vpop.f32.mrf.mxu1 }
 0x41f   : > { %951 = vst [vmem:[#allocation8 + $0x40] sm:$0xff] %v935_v23  ;;  %v938_v26 = vadd.f32 %v1274_v24, %v922_v22 }
 0x420   : > { %v883_v27 = vpop.f32.mrf.mxu1 }
 0x421   : > { %954 = vst [vmem:[#allocation8 + $0x58] sm:$0xff] %v938_v26  ;;  %v936_v29 = vadd.f32 %v920_v25, %v883_v27 }
 0x422   : > { %v1277_v30 = vpop.f32.mrf.mxu1 }
 0x423   : > { %952 = vst [vmem:[#allocation8 + $0x48] sm:$0xff] %v936_v29  ;;  %v941_v32 = vadd.f32 %v1277_v30, %v925_v28 }
 0x424   : > { %v896_v33 = vpop.f32.mrf.mxu1 }
 0x425   : > { %957 = vst [vmem:[#allocation8 + $0x70] sm:$0xff] %v941_v32  ;;  %v939_v35 = vadd.f32 %v923_v31, %v896_v33 }
 0x426   : > { %v1278_v36 = vpop.f32.mrf.mxu1 }
 0x427   : > { %955 = vst [vmem:[#allocation8 + $0x60] sm:$0xff] %v939_v35  ;;  %v942_v38 = vadd.f32 %v1278_v36, %v926_v34 }
 0x428   : > { %v899_v39 = vpop.f32.mrf.mxu1 }
 0x429   : > { %958 = vst [vmem:[#allocation8 + $0x78] sm:$0xff] %v942_v38  ;;  %v940_v40 = vadd.f32 %v924_v37, %v899_v39 }
 0x42b   : > { %956 = vst [vmem:[#allocation8 + $0x68] sm:$0xff] %v940_v40 }
 0x42c   : > { %1476 = shalt.err (!%p1473_p12)
}
 0x42d   : > { %s1538_s26 = smov 128   ;;  %s1539_s20 = smov 8  }
 0x42e   : > { %1290 = dma.vmem_to_hbm [thread:$0]  (%p1309_p13), %s966_s18, 2048, %s1761_s3, [#allocation4], %s1538_s26, %s1538_s26, %s1539_s20  }
 0x42f   : > { %1512 = dma.done.wait (%p1309_p13), [#allocation4], 2048  }
 0x430   : > { %1514 = vsyncadd (%p1309_p13), [#allocation4], 4294965248 }
 0x431 PF: > { %p15_p0 = scmp.ge.s32.totalorder %s1629_s5, 5   ;;  %s1774_s12 = smov %s1521_s13 }
 0x432   : > { %s1775_s13 = smov %s1525_s14  ;;  %s1776_s14 = smov %s1640_s9 }
 0x433   : > { %s1777_s15 = smov %s1629_s5  ;;  %17 = sbr.rel (!%p15_p0) target bundleno = 5 (0x5), region = 81 }
 0x438   :  { %981 = vsyncpa [#allocation3], 1 }
 0x439   :  { %983 = vsyncpa [#allocation3 + $0x1], 1 }
 0x43a   :  { %984 = vsyncpa [#allocation6], 1 }
 0x43b   :  { %985 = vsyncpa [#allocation4], 1 }
 0x43c   :  { %987 = vsyncpa [#allocation4 + $0x1], 1 }

</bundles_post_ra>
